<compile_context>
chip_gen: v6e
topology: v6e:2x2x1
jax: 0.10.0
libtpu: 0.0.40
codegen_flags: <defaults>
</compile_context>

<pallas_src>
import jax
import jax.numpy as jnp
from jax.experimental import pallas as pl
from jax.experimental.pallas import tpu as pltpu


def _mexican_hat_kernel(alpha2_ref, x_ref, o_ref):
    # alpha2_ref: SMEM scalar (1,) holding alpha^2
    # x_ref / o_ref: VMEM tiles (tile_rows, row_elems) in the input dtype
    a2 = alpha2_ref[0]
    x = x_ref[...].astype(jnp.float32)
    t = (x * x) * a2
    o_ref[...] = ((1.0 - t) * jnp.exp(-t)).astype(o_ref.dtype)


def mexican_hat(x: jax.Array, alpha: jax.Array) -> jax.Array:
    """Applies the Mexican-hat wavelet elementwise. x: any shape/float dtype."""
    orig_shape = x.shape
    dtype = x.dtype
    n = x.size
    if n == 0:
        return x

    # Pick the widest lane-dense row width (multiple of 128) that divides n,
    # so the common case needs no padding and no post-slice copy.
    pad = 0
    row_elems = None
    for w in (4096, 2048, 1024, 512, 256, 128):
        if n % w == 0:
            row_elems = w
            break
    if row_elems is None:
        # Ragged size: fall back to a 1024-wide slab with a small tail pad.
        row_elems = 1024
        pad = (-n) % row_elems

    xf = x.reshape(-1)
    if pad:
        xf = jnp.pad(xf, (0, pad))
    m = (n + pad) // row_elems
    x2d = xf.reshape(m, row_elems)

    # ~2 MiB blocks: big enough to amortize per-grid-step overhead (~0.35 us),
    # small enough (8 MiB double-buffered in+out) for all TPU generations'
    # default scoped VMEM, including v7x (64 MiB physical).
    itemsize = jnp.dtype(dtype).itemsize
    target_bytes = 2 * 1024 * 1024
    rows_wanted = max(1, target_bytes // (row_elems * itemsize))
    if rows_wanted >= m:
        tile_rows = m  # single block along rows (block == full dim, always legal)
    else:
        tile_rows = max(8, (rows_wanted // 8) * 8)  # keep (8,128) divisibility

    grid = (pl.cdiv(m, tile_rows),)

    alpha_f32 = jnp.asarray(alpha, dtype=jnp.float32)
    alpha2 = (alpha_f32 * alpha_f32).reshape((1,))

    out2d = pl.pallas_call(
        _mexican_hat_kernel,
        out_shape=jax.ShapeDtypeStruct((m, row_elems), dtype),
        grid_spec=pltpu.PrefetchScalarGridSpec(
            num_scalar_prefetch=0,
            grid=grid,
            in_specs=[
                pl.BlockSpec(memory_space=pltpu.MemorySpace.SMEM),  # alpha^2 scalar
                pl.BlockSpec((tile_rows, row_elems), lambda i: (i, 0)),
            ],
            out_specs=pl.BlockSpec((tile_rows, row_elems), lambda i: (i, 0)),
        ),
        compiler_params=pltpu.CompilerParams(
            dimension_semantics=("parallel",),
        ),
    )(alpha2, x2d)

    if pad:
        return out2d.reshape(-1)[:n].reshape(orig_shape)
    return out2d.reshape(orig_shape)


def mexican_hat_ref(x, alpha):
    xf = x.astype(jnp.float32)
    t = xf * xf * (alpha * alpha)
    return ((1.0 - t) * jnp.exp(-t)).astype(x.dtype)


if __name__ == "__main__":
    key = jax.random.PRNGKey(0)
    # Small NCHW-like input consistent with typical usage of the module.
    x = jax.random.normal(key, (2, 4, 16, 16), dtype=jnp.float32)

    # Deterministic parameter init, matching nn.Parameter(torch.tensor(1.0)).
    alpha = jnp.float32(1.0)

    y = mexican_hat(x, alpha)
    y = jax.block_until_ready(y)

    y_ref = mexican_hat_ref(x, alpha)
    assert y.shape == x.shape and y.dtype == x.dtype
    assert jnp.allclose(y, y_ref, atol=1e-5, rtol=1e-5)

    # Also exercise a ragged (non-128-multiple) size to verify the tail path.
    x2 = jax.random.normal(jax.random.PRNGKey(1), (3, 5, 7), dtype=jnp.float32)
    y2 = jax.block_until_ready(mexican_hat(x2, alpha))
    assert jnp.allclose(y2, mexican_hat_ref(x2, alpha), atol=1e-5, rtol=1e-5)

    print("KERNEL_OK")
</pallas_src>

<mosaic_0001>
module attributes {stable_mosaic.version = 11 : i64} {
  func.func @_mexican_hat_kernel(%arg0: i32, %arg1: memref<1xf32, #tpu.memory_space<smem>>, %arg2: memref<1x2048xf32, #tpu.memory_space<vmem>>, %arg3: memref<1x2048xf32, #tpu.memory_space<vmem>>) attributes {dimension_semantics = [#tpu.dimension_semantics<parallel>], iteration_bounds = array<i64: 1>, scalar_prefetch = 0 : i64, scratch_operands = 0 : i64, tpu.core_type = #tpu.core_type<tc>, window_params = [{transform_indices = @transform_0, window_bounds = array<i64: 1>}, {transform_indices = @transform_1, window_bounds = array<i64: 1, 2048>}, {transform_indices = @transform_2, window_bounds = array<i64: 1, 2048>}]} {
    %c0 = arith.constant 0 : index
    %0 = memref.load %arg1[%c0] : memref<1xf32, #tpu.memory_space<smem>>
    %c0_0 = arith.constant 0 : index
    %c0_1 = arith.constant 0 : index
    %1 = vector.load %arg2[%c0_0, %c0_1] : memref<1x2048xf32, #tpu.memory_space<vmem>>, vector<1x2048xf32>
    %2 = arith.mulf %1, %1 : vector<1x2048xf32>
    %3 = vector.broadcast %0 : f32 to vector<1x2048xf32>
    %4 = arith.mulf %2, %3 : vector<1x2048xf32>
    %cst = arith.constant 1.000000e+00 : f32
    %5 = vector.broadcast %cst : f32 to vector<1x2048xf32>
    %6 = arith.subf %5, %4 : vector<1x2048xf32>
    %cst_2 = arith.constant 0.000000e+00 : f32
    %7 = vector.broadcast %cst_2 : f32 to vector<1x2048xf32>
    %8 = arith.subf %7, %4 : vector<1x2048xf32>
    %9 = math.exp %8 : vector<1x2048xf32>
    %10 = arith.mulf %6, %9 : vector<1x2048xf32>
    %c0_3 = arith.constant 0 : index
    %c0_4 = arith.constant 0 : index
    %11 = vector.load %arg3[%c0_3, %c0_4] : memref<1x2048xf32, #tpu.memory_space<vmem>>, vector<1x2048xf32>
    tpu.vector_store %arg3[%c0_3, %c0_4], %10 {strides = array<i32>} : memref<1x2048xf32, #tpu.memory_space<vmem>>, vector<1x2048xf32>,
    return
  }
  func.func @transform_0(%arg0: i32) -> i32 {
    %c0_i32 = arith.constant 0 : i32
    %c0_i32_0 = arith.constant 0 : i32
    return %c0_i32 : i32
  }
  func.func @transform_1(%arg0: i32) -> (i32, i32) {
    %c0_i32 = arith.constant 0 : i32
    %c0_i32_0 = arith.constant 0 : i32
    return %arg0, %c0_i32 : i32, i32
  }
  func.func @transform_2(%arg0: i32) -> (i32, i32) {
    %c0_i32 = arith.constant 0 : i32
    %c0_i32_0 = arith.constant 0 : i32
    return %arg0, %c0_i32 : i32, i32
  }
}

</mosaic_0001>

<bundles_post_ra>
// kernel: tpu_custom_call.1
= control target key start
LH: loop header
LB: loop body
LE: loop exit
PB: predicated region body
PF: predicated region fallthrough
CT: control target
= control target key end

     0   :  { %8 = vsyncpa [#allocation4], 0  ;;  %s136_s0 = inlined_call_operand.<no memory space> [shape: f32[1], index: 0, kind: input, shape index: {}]   ;;  %s137_s1 = inlined_call_operand.hbm [shape: f32[1,2048], index: 1, kind: input, shape index: {}]   ;;  %s138_s2 = inlined_call_operand.hbm [shape: f32[1,2048], index: 2, kind: output, shape index: {}]  }
   0x1   :  { %9 = vsyncpa [#allocation5], 0  ;;  %s110_s9 = smov [#allocation3]  }
   0x2   :  { %s18_s10 = sshll.u32 %s110_s9, 4  ;;  %s19_s10 = int_to_ptr.vmem [resolvable:$true] %s18_s10 }
   0x3   :  { %s74_s11 = scalar_lea.vmem %s19_s10, 256  ;;  %p79_p1 = scmp.lt.s32.totalorder %s19_s10, %s19_s10 }
   0x4   :  { %p75_p0 = scmp.ne.s32.totalorder %s19_s10, %s74_s11  ;;  %p80_p2 = scmp.lt.s32.totalorder %s74_s11, %s74_s11 }
   0x6   :  { %p81_p3 = por %p80_p2, %p79_p1 }
   0x8   :  { %p82_p4 = pnand %p81_p3, %p75_p0 }
   0xa   :  { %85 = shalt.err (!%p82_p4)
}
   0xb   :  { %21 = dma.hbm_to_vmem [thread:$0]  %s137_s1, 256, %s19_s10, [#allocation4]  }
   0xc   :  { %106 = dma.done.wait [#allocation4], 256  }
   0xd   :  { %107 = vsyncadd [#allocation4], 4294967040  ;;  %v26_v0 = vld [vmem:[#allocation3] sm:$0xff]  ;;  %v30_v1 = vstv %s136_s0  ;;  %v27_v2 = vld [vmem:[#allocation3 + $0x8] sm:$0xff]  ;;  %s111_s1 = smov [#allocation6]  }
   0xe   :  { %v28_v3 = vmul.f32 %v26_v0, %v26_v0  ;;  %v29_v4 = vmul.f32 %v27_v2, %v27_v2  ;;  %s51_s16 = sshll.u32 %s111_s1, 4  ;;  %s52_s16 = int_to_ptr.vmem [resolvable:$true] %s51_s16 }
   0xf   :  { %s86_s0 = scalar_lea.vmem %s52_s16, 256  ;;  %p91_p6 = scmp.lt.s32.totalorder %s52_s16, %s52_s16 }
  0x10   :  { %v31_v5 = vmul.f32 %v30_v1, %v28_v3  ;;  %v32_v6 = vmul.f32 %v30_v1, %v29_v4  ;;  %p87_p5 = scmp.ne.s32.totalorder %s52_s16, %s86_s0  ;;  %p92_p7 = scmp.lt.s32.totalorder %s86_s0, %s86_s0 }
  0x12   :  { %v35_v7 = vsub.f32 0.0, %v31_v5  ;;  %v36_v8 = vsub.f32 0.0, %v32_v6  ;;  %v33_v11 = vsub.f32 1.0, %v31_v5  ;;  %v34_v12 = vsub.f32 1.0, %v32_v6  ;;  %p93_p8 = por %p92_p7, %p91_p6 }
  0x14   :  { %v37_v9 = vmul.f32 1.442695, %v35_v7  ;;  %v39_v10 = vmul.f32 1.442695, %v36_v8  ;;  %p94_p9 = pnand %p93_p8, %p87_p5 }
  0x16   :  { %62 = vpow2.f32 %v37_v9 }
  0x17   :  { %64 = vpow2.f32 %v39_v10 }
  0x23   :  { %v63_v13 = vpop.eup %62 }
  0x24   :  { %v65_v14 = vpop.eup %64  ;;  %v41_v15 = vmul.f32 %v63_v13, %v33_v11 }
  0x25   :  { %v42_v16 = vmul.f32 %v65_v14, %v34_v12 }
  0x26   :  { %43 = vst [vmem:[#allocation6] sm:$0xff] %v41_v15 }
  0x27   :  { %44 = vst [vmem:[#allocation6 + $0x8] sm:$0xff] %v42_v16 }
  0x28   :  { %97 = shalt.err (!%p94_p9)
}
  0x29   :  { %54 = dma.vmem_to_hbm [thread:$0]  %s52_s16, 256, %s138_s2, [#allocation5]  }
  0x2a   :  { %108 = dma.done.wait [#allocation5], 256  }
  0x2b   :  { %109 = vsyncadd [#allocation5], 4294967040 }
  0x2c   :  { %58 = vsyncpa [#allocation4], 1 }
  0x2d   :  { %59 = vsyncpa [#allocation5], 1 }

</bundles_post_ra>
